<compile_context>
chip_gen: v5e
topology: v5e:2x2
jax: 0.10.0
libtpu: 0.0.40
codegen_flags: <defaults>
</compile_context>

<pallas_src>
import functools
import math

import jax
import jax.numpy as jnp
from jax.experimental import pallas as pl
from jax.experimental.pallas import tpu as pltpu


_LOG_EPS = math.log(1e-4)
_LOG_1M_EPS = math.log(1.0 - 1e-4)


# ----------------------------------------------------------------------------
# Kernel 1: CenterNet focal loss (row-tiled, per-block partial sums, parallel)
# ----------------------------------------------------------------------------
def _focal_kernel(pred_ref, gt_ref, out_ref, *, rows, rt):
    """pred_ref: (rt, HW) raw logits; gt_ref: (rt, HW) gaussian heatmap.
    out_ref (SMEM, (1, 2)): [sum(pos_loss + neg_loss), num_pos] for this block."""
    i = pl.program_id(0)

    x = pred_ref[...].astype(jnp.float32)
    gt = gt_ref[...].astype(jnp.float32)

    if rows % rt != 0:
        # Ragged last tile: rows past `rows` hold garbage; neutralize them.
        rid = jax.lax.broadcasted_iota(jnp.int32, (x.shape[0], 1), 0) + i * rt
        valid = rid < rows                      # (rt, 1)
        x = jnp.where(valid, x, 0.0)
        gt = jnp.where(valid, gt, 2.0)          # pos == neg == 0 on invalid rows

    # log-sigmoid identity: log(clip(sigmoid(x))) and log(1 - clip(sigmoid(x)))
    # without computing two separate logs of a clipped sigmoid.
    lse = jnp.log1p(jnp.exp(-jnp.abs(x)))       # log(1 + e^{-|x|})
    logp = jnp.minimum(x, 0.0) - lse            # log_sigmoid(x)
    log1mp = logp - x                           # log_sigmoid(-x) = log(1 - sigmoid(x))
    logp = jnp.clip(logp, _LOG_EPS, _LOG_1M_EPS)
    log1mp = jnp.clip(log1mp, _LOG_EPS, _LOG_1M_EPS)
    p = jnp.exp(logp)                           # == clip(sigmoid(x), 1e-4, 1-1e-4)
    omp = 1.0 - p

    pos = (gt == 1.0).astype(jnp.float32)
    neg = (gt < 1.0).astype(jnp.float32)        # padded/masked rows (gt=2) -> pos=neg=0
    omg = 1.0 - gt
    neg_w = omg * omg * omg * omg               # (1 - gt)^4

    pos_loss = logp * omp * omp * pos
    neg_loss = log1mp * p * p * neg_w * neg

    out_ref[0, 0] = jnp.sum(pos_loss + neg_loss)
    out_ref[0, 1] = jnp.sum(pos)


def focal_loss(hm_logits, gt_hm, *, tile_bytes=8 << 20):
    B, C, H, W = hm_logits.shape
    HW = H * W
    rows = B * C

    # Native dtype streaming (no wrapper cast) and no wrapper padding.
    pred2d = hm_logits.reshape(rows, HW)
    gt2d = gt_hm.reshape(rows, HW)

    itemsize = max(jnp.dtype(pred2d.dtype).itemsize, jnp.dtype(gt2d.dtype).itemsize)
    sub = 8 * max(1, 4 // max(itemsize, 1))      # 8 f32 / 16 bf16 / 32 int8
    rt = (tile_bytes // max(HW * itemsize, 1)) // sub * sub
    rt = max(sub, min(rt, ((rows + sub - 1) // sub) * sub))

    nblk = pl.cdiv(rows, rt)

    # 2 inputs x 2 pipeline buffers per input; cap below v7x physical VMEM.
    per_buf = rt * HW * itemsize
    vmem_limit = min(4 * per_buf + (8 << 20), 48 << 20)
    vmem_limit = max(vmem_limit, 4 * per_buf + (2 << 20))

    kernel = functools.partial(_focal_kernel, rows=rows, rt=rt)
    partial_sums = pl.pallas_call(
        kernel,
        out_shape=jax.ShapeDtypeStruct((nblk, 2), jnp.float32),
        grid=(nblk,),
        in_specs=[pl.BlockSpec((rt, HW), lambda i: (i, 0)),
                  pl.BlockSpec((rt, HW), lambda i: (i, 0))],
        out_specs=pl.BlockSpec((1, 2), lambda i: (i, 0),
                               memory_space=pltpu.MemorySpace.SMEM),
        compiler_params=pltpu.CompilerParams(
            dimension_semantics=("parallel",),   # independent partial sums per block
            vmem_limit_bytes=int(vmem_limit)),
    )(pred2d, gt2d)

    total = jnp.sum(partial_sums[:, 0])
    num_pos = jnp.sum(partial_sums[:, 1])
    # if num_pos == 0: pos_loss is identically 0, so -total == -neg_sum.
    return jnp.where(num_pos > 0.0, -total / jnp.maximum(num_pos, 1.0), -total)


# ----------------------------------------------------------------------------
# Kernel 2: fused RegL1 for all regression heads (chunked one-hot MXU gather)
# ----------------------------------------------------------------------------
def _fused_reg_kernel(ind_ref, mask_ref, feat_ref, tgt_ref, out_ref, *,
                      head_channels, cs):
    """Per-batch block (parallel grid).  ind_ref (1,1,Kp) int32; mask_ref (1,1,Kp) f32;
    feat_ref (1, Ct, HW) lane-dense features (heads concat along C);
    tgt_ref (1, Ct, Kp) mask-premultiplied targets.
    out_ref (SMEM, (1, n_heads)): per-head sum |pred*m - tgt*m| for this batch."""
    ind2 = ind_ref[0]                                   # (1, Kp) int32
    m2 = mask_ref[0]                                    # (1, Kp) f32
    tgt = tgt_ref[0].astype(jnp.float32)                # (Ct, Kp), already * mask
    Ct, Kp = tgt.shape
    HW = feat_ref.shape[2]
    n_chunks = HW // cs

    use_bf16 = feat_ref.dtype == jnp.bfloat16
    oh_dtype = jnp.bfloat16 if use_bf16 else jnp.float32
    m_cast = m2.astype(oh_dtype)
    zero = jnp.zeros((), oh_dtype)

    # Hoisted out of the chunk loop: row iota 0..cs-1 (compare against shifted ind).
    base_iota = jax.lax.broadcasted_iota(jnp.int32, (cs, Kp), 0)

    def body(c, acc):
        start = c * cs
        if cs % 128 == 0:
            start = pl.multiple_of(start, 128)
        fchunk = feat_ref[0, :, pl.ds(start, cs)]                  # (Ct, cs) native dtype
        shifted = ind2 - c * cs                                    # (1, Kp)
        onehot = jnp.where(base_iota == shifted, m_cast, zero)     # (cs, Kp)
        if use_bf16:
            part = jnp.dot(fchunk, onehot, preferred_element_type=jnp.float32)
        else:
            part = jnp.dot(fchunk.astype(jnp.float32), onehot,
                           preferred_element_type=jnp.float32,
                           precision=jax.lax.Precision.HIGHEST)    # exact f32 gather
        return acc + part

    pred = jax.lax.fori_loop(0, n_chunks, body,
                             jnp.zeros((Ct, Kp), jnp.float32),
                             unroll=n_chunks <= 4)

    diff = jnp.abs(pred - tgt)                                     # (Ct, Kp)
    c0 = 0
    for h, ch in enumerate(head_channels):
        out_ref[0, h] = jnp.sum(diff[c0:c0 + ch, :])
        c0 += ch


def fused_reg_l1(feature_maps, mask, ind, targets):
    """feature_maps: list of (B, Ch, H, W); targets: list of (B, K, Ch);
    mask: (B, K); ind: (B, K) flat spatial indices.
    Returns a list of per-head RegL1 losses (torch RegL1Loss semantics)."""
    B, _, H, W = feature_maps[0].shape
    HW = H * W
    K = ind.shape[1]
    head_channels = tuple(int(f.shape[1]) for f in feature_maps)
    n_heads = len(feature_maps)

    # Lane-dense feature slab (B, C_total, HW): no NCHW->NHWC transpose needed.
    feat = jnp.concatenate([f.reshape(B, f.shape[1], HW) for f in feature_maps],
                           axis=1)
    Ct = feat.shape[1]
    feat_itemsize = jnp.dtype(feat.dtype).itemsize

    mask_f = mask.astype(jnp.float32)
    tgt = jnp.concatenate([t.astype(jnp.float32) for t in targets], axis=2)  # (B,K,Ct)
    tgt = tgt * mask_f[:, :, None]                       # pred*m vs tgt*m semantics
    tgt_t = jnp.transpose(tgt, (0, 2, 1))                # (B, Ct, K), tiny

    # Lane-pad K to a multiple of 128 (padded slots: mask=0, ind=0, tgt=0).
    Kp = pl.cdiv(K, 128) * 128
    ind_p = ind.astype(jnp.int32)
    mask_p = mask_f
    if Kp != K:
        pad = Kp - K
        tgt_t = jnp.pad(tgt_t, ((0, 0), (0, 0), (0, pad)))
        mask_p = jnp.pad(mask_f, ((0, 0), (0, pad)))
        ind_p = jnp.pad(ind_p, ((0, 0), (0, pad)))
    ind3 = ind_p.reshape(B, 1, Kp)
    mask3 = mask_p.reshape(B, 1, Kp)

    # HW chunk: largest multiple of 128 that divides HW and is <= 2048
    # (bounds the in-kernel one-hot to ~1-2 MiB); else a single chunk.
    cs = HW
    for cand in range(2048, 0, -128):
        if cand <= HW and HW % cand == 0:
            cs = cand
            break

    kernel = functools.partial(_fused_reg_kernel,
                               head_channels=head_channels, cs=cs)

    # VMEM budget: double-buffered feat & target blocks + one-hot chunk + accumulator.
    need = (2 * Ct * HW * feat_itemsize + 2 * Ct * Kp * 4
            + cs * Kp * 8 + Ct * Kp * 4)
    vmem_limit = min(max(need + (4 << 20), 16 << 20), 48 << 20)

    sums = pl.pallas_call(
        kernel,
        out_shape=jax.ShapeDtypeStruct((B, n_heads), jnp.float32),
        grid=(B,),
        in_specs=[pl.BlockSpec((1, 1, Kp), lambda b: (b, 0, 0)),    # ind
                  pl.BlockSpec((1, 1, Kp), lambda b: (b, 0, 0)),    # mask
                  pl.BlockSpec((1, Ct, HW), lambda b: (b, 0, 0)),   # features
                  pl.BlockSpec((1, Ct, Kp), lambda b: (b, 0, 0))],  # targets*mask
        out_specs=pl.BlockSpec((1, n_heads), lambda b: (b, 0),
                               memory_space=pltpu.MemorySpace.SMEM),
        compiler_params=pltpu.CompilerParams(
            dimension_semantics=("parallel",),    # per-batch partial sums, no carry
            vmem_limit_bytes=int(vmem_limit)),
    )(ind3, mask3, feat, tgt_t)

    per_head = jnp.sum(sums, axis=0)                               # (n_heads,)
    # Denominator: expanded-mask sum = C_head * sum(reg_mask), as in torch.
    denoms = jnp.asarray(head_channels, jnp.float32) * jnp.sum(mask_f) + 1e-4
    losses = per_head / denoms
    return [losses[h] for h in range(n_heads)]


# ----------------------------------------------------------------------------
# CtdetLoss.forward
# ----------------------------------------------------------------------------
def ctdet_loss(outputs, batch, opt):
    ns = opt['num_stacks']
    hm_loss = jnp.float32(0.0)
    off_loss = jnp.float32(0.0)
    wh_loss = jnp.float32(0.0)
    direct_loss = jnp.float32(0.0)
    use_off = opt['reg_offset'] and opt['off_weight'] > 0

    for s in range(ns):
        output = outputs[s]
        if isinstance(output, list):
            output = output[0]
        # not opt.mse_loss -> _sigmoid is applied inside the focal kernel
        hm_loss = hm_loss + focal_loss(output['hm'], batch['hm']) / ns
        # TODO(synk): loss_hm_magnitude branch (FocalLossMagnitude*) not exercised; opt disables it.
        # TODO(synk): direct_loss == 'cls' (CrossEntropyLoss) not exercised; opt uses 'reg'.

        feats, tgts = [], []
        if use_off:
            feats.append(output['reg']); tgts.append(batch['reg'])
        feats.append(output['wh']); tgts.append(batch['wh'])
        feats.append(output['direct']); tgts.append(batch['direct'])

        head_losses = fused_reg_l1(feats, batch['reg_mask'], batch['ind'], tgts)
        idx = 0
        if use_off:
            off_loss = off_loss + head_losses[idx] / ns
            idx += 1
        wh_loss = wh_loss + head_losses[idx] / ns
        direct_loss = direct_loss + head_losses[idx + 1] / ns

    loss = (opt['hm_weight'] * hm_loss + opt['off_weight'] * off_loss
            + opt['direct_weight'] * direct_loss)
    loss = loss + opt['wh_weight'] * wh_loss   # torch adds in-place; stats 'loss' aliases it
    loss_stats = {'loss': loss, 'hm_loss': hm_loss, 'off_loss': off_loss,
                  'direct_loss': direct_loss, 'wh_loss': wh_loss}
    return loss, loss_stats


# ----------------------------------------------------------------------------
if __name__ == "__main__":
    B, Chm, H, W, K = 2, 4, 16, 16, 8   # small shapes; 2 channels each for wh/reg/direct

    opt = dict(num_stacks=1, mse_loss=False, reg_loss='l1', direct_loss='reg',
               loss_hm_magnitude=False, reg_offset=True,
               hm_weight=1.0, off_weight=1.0, wh_weight=0.1, direct_weight=1.0)

    key = jax.random.PRNGKey(0)
    ks = jax.random.split(key, 10)

    hm_logits = jax.random.normal(ks[0], (B, Chm, H, W), jnp.float32)
    wh_out = jax.random.normal(ks[1], (B, 2, H, W), jnp.float32)
    reg_out = jax.random.normal(ks[2], (B, 2, H, W), jnp.float32)
    direct_out = jax.random.normal(ks[3], (B, 2, H, W), jnp.float32)

    # ground-truth heatmap in [0, 0.95) with exact 1.0 peaks at object centers
    gt_hm = jax.random.uniform(ks[4], (B, Chm, H, W), jnp.float32, 0.0, 0.95)
    ind = jax.random.randint(ks[5], (B, K), 0, H * W).astype(jnp.int32)
    ys = (ind // W).reshape(-1)
    xs = (ind % W).reshape(-1)
    bidx = jnp.repeat(jnp.arange(B), K)
    gt_hm = gt_hm.at[bidx, 0, ys, xs].set(1.0)

    reg_mask = (jax.random.uniform(ks[6], (B, K)) > 0.3).astype(jnp.float32)
    wh_t = jax.random.uniform(ks[7], (B, K, 2), jnp.float32) * 10.0
    reg_t = jax.random.uniform(ks[8], (B, K, 2), jnp.float32)
    direct_t = jax.random.normal(ks[9], (B, K, 2), jnp.float32)

    outputs = [{'hm': hm_logits, 'wh': wh_out, 'reg': reg_out, 'direct': direct_out}]
    batch = {'hm': gt_hm, 'reg_mask': reg_mask, 'ind': ind,
             'wh': wh_t, 'reg': reg_t, 'direct': direct_t}

    loss, loss_stats = ctdet_loss(outputs, batch, opt)
    jax.block_until_ready(loss)
    for v in loss_stats.values():
        jax.block_until_ready(v)
    print("KERNEL_OK")
</pallas_src>

<mosaic_0001>
module attributes {stable_mosaic.version = 11 : i64} {
  func.func @_focal_kernel(%arg0: i32, %arg1: memref<8x256xf32, #tpu.memory_space<vmem>>, %arg2: memref<8x256xf32, #tpu.memory_space<vmem>>, %arg3: memref<1x2xf32, #tpu.memory_space<smem>>) attributes {dimension_semantics = [#tpu.dimension_semantics<parallel>], iteration_bounds = array<i64: 1>, scalar_prefetch = 0 : i64, scratch_operands = 0 : i64, tpu.core_type = #tpu.core_type<tc>, window_params = [{transform_indices = @transform_0, window_bounds = array<i64: 8, 256>}, {transform_indices = @transform_1, window_bounds = array<i64: 8, 256>}, {transform_indices = @transform_2, window_bounds = array<i64: 1, 2>}]} {
    %c0 = arith.constant 0 : index
    %c0_0 = arith.constant 0 : index
    %0 = vector.load %arg1[%c0, %c0_0] : memref<8x256xf32, #tpu.memory_space<vmem>>, vector<8x256xf32>
    %c0_1 = arith.constant 0 : index
    %c0_2 = arith.constant 0 : index
    %1 = vector.load %arg2[%c0_1, %c0_2] : memref<8x256xf32, #tpu.memory_space<vmem>>, vector<8x256xf32>
    %2 = math.absf %0 : vector<8x256xf32>
    %cst = arith.constant 0.000000e+00 : f32
    %3 = vector.broadcast %cst : f32 to vector<8x256xf32>
    %4 = arith.subf %3, %2 : vector<8x256xf32>
    %5 = math.exp %4 : vector<8x256xf32>
    %6 = math.log1p %5 : vector<8x256xf32>
    %cst_3 = arith.constant 0.000000e+00 : f32
    %7 = vector.broadcast %cst_3 : f32 to vector<8x256xf32>
    %8 = arith.minimumf %0, %7 : vector<8x256xf32>
    %9 = arith.subf %8, %6 : vector<8x256xf32>
    %10 = arith.subf %9, %0 : vector<8x256xf32>
    %cst_4 = arith.constant -9.21034049 : f32
    %cst_5 = arith.constant -1.000050e-04 : f32
    %11 = vector.broadcast %cst_4 : f32 to vector<8x256xf32>
    %12 = arith.maximumf %11, %9 : vector<8x256xf32>
    %13 = vector.broadcast %cst_5 : f32 to vector<8x256xf32>
    %14 = arith.minimumf %13, %12 : vector<8x256xf32>
    %cst_6 = arith.constant -9.21034049 : f32
    %cst_7 = arith.constant -1.000050e-04 : f32
    %15 = vector.broadcast %cst_6 : f32 to vector<8x256xf32>
    %16 = arith.maximumf %15, %10 : vector<8x256xf32>
    %17 = vector.broadcast %cst_7 : f32 to vector<8x256xf32>
    %18 = arith.minimumf %17, %16 : vector<8x256xf32>
    %19 = math.exp %14 : vector<8x256xf32>
    %cst_8 = arith.constant 1.000000e+00 : f32
    %20 = vector.broadcast %cst_8 : f32 to vector<8x256xf32>
    %21 = arith.subf %20, %19 : vector<8x256xf32>
    %cst_9 = arith.constant 1.000000e+00 : f32
    %22 = vector.broadcast %cst_9 : f32 to vector<8x256xf32>
    %23 = arith.cmpf oeq, %1, %22 : vector<8x256xf32>
    %24 = arith.extui %23 : vector<8x256xi1> to vector<8x256xi32>
    %25 = arith.sitofp %24 : vector<8x256xi32> to vector<8x256xf32>
    %cst_10 = arith.constant 1.000000e+00 : f32
    %26 = vector.broadcast %cst_10 : f32 to vector<8x256xf32>
    %27 = arith.cmpf olt, %1, %26 : vector<8x256xf32>
    %28 = arith.extui %27 : vector<8x256xi1> to vector<8x256xi32>
    %29 = arith.sitofp %28 : vector<8x256xi32> to vector<8x256xf32>
    %cst_11 = arith.constant 1.000000e+00 : f32
    %30 = vector.broadcast %cst_11 : f32 to vector<8x256xf32>
    %31 = arith.subf %30, %1 : vector<8x256xf32>
    %32 = arith.mulf %31, %31 : vector<8x256xf32>
    %33 = arith.mulf %32, %31 : vector<8x256xf32>
    %34 = arith.mulf %33, %31 : vector<8x256xf32>
    %35 = arith.mulf %14, %21 : vector<8x256xf32>
    %36 = arith.mulf %35, %21 : vector<8x256xf32>
    %37 = arith.mulf %36, %25 : vector<8x256xf32>
    %38 = arith.mulf %18, %19 : vector<8x256xf32>
    %39 = arith.mulf %38, %19 : vector<8x256xf32>
    %40 = arith.mulf %39, %34 : vector<8x256xf32>
    %41 = arith.mulf %40, %29 : vector<8x256xf32>
    %42 = arith.addf %37, %41 : vector<8x256xf32>
    %43 = vector.shape_cast %42 : vector<8x256xf32> to vector<1x8x256xf32>
    %cst_12 = arith.constant dense<0.000000e+00> : vector<1xf32>
    %44 = vector.multi_reduction <add>, %43, %cst_12 [1, 2] : vector<1x8x256xf32> to vector<1xf32>
    %45 = vector.shape_cast %44 : vector<1xf32> to vector<1x1x1xf32>
    %46 = vector.extract %45[0, 0, 0] : f32 from vector<1x1x1xf32>
    %c0_13 = arith.constant 0 : index
    %c0_14 = arith.constant 0 : index
    %47 = memref.load %arg3[%c0_13, %c0_14] : memref<1x2xf32, #tpu.memory_space<smem>>
    memref.store %46, %arg3[%c0_13, %c0_14] : memref<1x2xf32, #tpu.memory_space<smem>>
    %48 = vector.shape_cast %25 : vector<8x256xf32> to vector<1x8x256xf32>
    %cst_15 = arith.constant dense<0.000000e+00> : vector<1xf32>
    %49 = vector.multi_reduction <add>, %48, %cst_15 [1, 2] : vector<1x8x256xf32> to vector<1xf32>
    %50 = vector.shape_cast %49 : vector<1xf32> to vector<1x1x1xf32>
    %51 = vector.extract %50[0, 0, 0] : f32 from vector<1x1x1xf32>
    %c0_16 = arith.constant 0 : index
    %c1 = arith.constant 1 : index
    %52 = memref.load %arg3[%c0_16, %c1] : memref<1x2xf32, #tpu.memory_space<smem>>
    memref.store %51, %arg3[%c0_16, %c1] : memref<1x2xf32, #tpu.memory_space<smem>>
    return
  }
  func.func @transform_0(%arg0: i32) -> (i32, i32) {
    %c0_i32 = arith.constant 0 : i32
    %c0_i32_0 = arith.constant 0 : i32
    return %arg0, %c0_i32 : i32, i32
  }
  func.func @transform_1(%arg0: i32) -> (i32, i32) {
    %c0_i32 = arith.constant 0 : i32
    %c0_i32_0 = arith.constant 0 : i32
    return %arg0, %c0_i32 : i32, i32
  }
  func.func @transform_2(%arg0: i32) -> (i32, i32) {
    %c0_i32 = arith.constant 0 : i32
    %c0_i32_0 = arith.constant 0 : i32
    return %arg0, %c0_i32 : i32, i32
  }
}

</mosaic_0001>

<bundles_post_ra>
// kernel: tpu_custom_call.1
= control target key start
LH: loop header
LB: loop body
LE: loop exit
PB: predicated region body
PF: predicated region fallthrough
CT: control target
= control target key end

     0   :  { %7 = vsyncpa [#allocation3], 0  ;;  %s286_s0 = inlined_call_operand.hbm [shape: f32[8,256], index: 0, kind: input, shape index: {}]   ;;  %s287_s1 = inlined_call_operand.hbm [shape: f32[8,256], index: 1, kind: input, shape index: {}]   ;;  %s288_s2 = inlined_call_operand.hbm [shape: f32[1,2], index: 2, kind: output, shape index: {}]  }
   0x1   :  { %8 = vsyncpa [#allocation6], 0 }
   0x2   :  { %9 = vsyncpa [#allocation4], 0  ;;  %s15_s11 = sshll.u32 %s286_s0, 4  ;;  %s257_s12 = smov [#allocation2]   ;;  %s16_s11 = int_to_ptr.hbm [resolvable:$true] %s15_s11 }
   0x3   :  { %s17_s13 = sshll.u32 %s257_s12, 4  ;;  %s26_s16 = sshll.u32 %s287_s1, 4  ;;  %s18_s13 = int_to_ptr.vmem [resolvable:$true] %s17_s13  ;;  %s27_s16 = int_to_ptr.hbm [resolvable:$true] %s26_s16 }
   0x4   :  { %20 = dma.hbm_to_vmem [thread:$0]  %s16_s11, 256, %s18_s13, [#allocation3]  }
   0x5   :  { %s258_s17 = smov [#allocation5]  }
   0x6   :  { %s28_s18 = sshll.u32 %s258_s17, 4  ;;  %s29_s18 = int_to_ptr.vmem [resolvable:$true] %s28_s18 }
   0x7   :  { %31 = dma.hbm_to_vmem [thread:$0]  %s27_s16, 256, %s29_s18, [#allocation6]  }
   0x8   :  { %251 = dma.done.wait [#allocation3], 256  }
   0x9   :  { %252 = vsyncadd [#allocation3], 4294967040 }
   0xa   :  { %253 = dma.done.wait [#allocation6], 256  }
   0xb   :  { %254 = vsyncadd [#allocation6], 4294967040  ;;  %v40_v0 = vld [vmem:[#allocation2] sm:$0xff]  ;;  %v41_v1 = vld [vmem:[#allocation2 + $0x8] sm:$0xff]  ;;  %v259_v60 = vmov 0.0   ;;  %s155_s20 = sshll.u32 %s288_s2, 4  ;;  %s156_s20 = int_to_ptr.hbm [resolvable:$true] %s155_s20 }
   0xc   :  { %v44_v2 = vand.u32 2147483647, %v40_v0  ;;  %v45_v3 = vand.u32 2147483647, %v41_v1  ;;  %v70_v21 = vmin.f32 %v40_v0, 0.0  ;;  %v71_v24 = vmin.f32 %v41_v1, 0.0 }
   0xd   :  { %v42_v27 = vld [vmem:[#allocation5] sm:$0xff]  ;;  %v43_v30 = vld [vmem:[#allocation5 + $0x8] sm:$0xff]  ;;  %s260_s22 = smov [#allocation7]  }
   0xe   :  { %v46_v4 = vsub.f32 0.0, %v44_v2  ;;  %v47_v5 = vsub.f32 0.0, %v45_v3  ;;  %v102_v35 = vsub.f32 1.0, %v42_v27  ;;  %v103_v38 = vsub.f32 1.0, %v43_v30 }
   0xf   :  { %vm90_vm2 = vcmp.eq.f32.partialorder %v42_v27, 1.0  ;;  %vm91_vm3 = vcmp.eq.f32.partialorder %v43_v30, 1.0  ;;  %vm96_vm4 = vcmp.lt.f32.partialorder %v42_v27, 1.0  ;;  %vm97_vm5 = vcmp.lt.f32.partialorder %v43_v30, 1.0 }
  0x10   :  { %v48_v6 = vmul.f32 1.442695, %v46_v4  ;;  %v50_v7 = vmul.f32 1.442695, %v47_v5  ;;  %v104_v43 = vmul.f32 %v102_v35, %v102_v35  ;;  %v105_v45 = vmul.f32 %v103_v38, %v103_v38 }
  0x11   :  { %v167_v61 = vsel %vm90_vm2, 1.0, %v259_v60  ;;  %v169_v62 = vsel %vm96_vm4, 1.0, %v259_v60  ;;  %v170_v2 = vsel %vm97_vm5, 1.0, %v259_v60 }
  0x12   :  { %179 = vpow2.f32 %v48_v6  ;;  %v106_v47 = vmul.f32 %v104_v43, %v102_v35  ;;  %v107_v49 = vmul.f32 %v105_v45, %v103_v38 }
  0x13   :  { %181 = vpow2.f32 %v50_v7 }
  0x14   :  { %v108_v53 = vmul.f32 %v106_v47, %v102_v35  ;;  %v109_v56 = vmul.f32 %v107_v49, %v103_v38 }
  0x18   :  { %v180_v8 = vpop.eup %179 }
  0x19   :  { %v182_v9 = vpop.eup %181  ;;  %v52_v10 = vadd.f32 1.0, %v180_v8  ;;  %v55_v11 = vmul.f32 -0.5, %v180_v8  ;;  %v58_v15 = vand.u32 2147483647, %v180_v8 }
  0x1a   :  { %v61_v12 = vadd.f32 1.0, %v182_v9  ;;  %v64_v13 = vmul.f32 -0.5, %v182_v9  ;;  %v67_v17 = vand.u32 2147483647, %v182_v9 }
  0x1b   :  { %183 = vlog2.f32 %v52_v10  ;;  %v56_v14 = vadd.f32 1.0, %v55_v11  ;;  %vm59_vm0 = vcmp.lt.f32.partialorder %v58_v15, 0.0004427343 }
  0x1c   :  { %185 = vlog2.f32 %v61_v12  ;;  %v65_v16 = vadd.f32 1.0, %v64_v13  ;;  %vm68_vm1 = vcmp.lt.f32.partialorder %v67_v17, 0.0004427343 }
  0x1d   :  { %v57_v18 = vmul.f32 %v180_v8, %v56_v14 }
  0x1e   :  { %v66_v20 = vmul.f32 %v182_v9, %v65_v16 }
  0x21   :  { %v184_v19 = vpop.eup %183 }
  0x22   :  { %v186_v22 = vpop.eup %185  ;;  %v54_v23 = vmul.f32 0.6931472, %v184_v19 }
  0x23   :  { %v63_v25 = vmul.f32 0.6931472, %v186_v22 }
  0x24   :  { %v60_v26 = vsel %vm59_vm0, %v57_v18, %v54_v23 }
  0x25   :  { %v69_v28 = vsel %vm68_vm1, %v66_v20, %v63_v25  ;;  %v72_v29 = vsub.f32 %v70_v21, %v60_v26 }
  0x26   :  { %v73_v31 = vsub.f32 %v71_v24, %v69_v28 }
  0x27   :  { %v76_v32 = vmax.f32 %v72_v29, -9.2103405  ;;  %v74_v33 = vsub.f32 %v72_v29, %v40_v0 }
  0x28   :  { %v77_v34 = vmax.f32 %v73_v31, -9.2103405  ;;  %v75_v36 = vsub.f32 %v73_v31, %v41_v1  ;;  %v168_v1 = vsel %vm91_vm3, 1.0, %v259_v60 }
  0x29   :  { %v78_v37 = vmin.f32 %v76_v32, -0.000100005  ;;  %v80_v41 = vmax.f32 %v74_v33, -9.2103405  ;;  %v138_v14 = vadd.f32 %v168_v1, %v167_v61 }
  0x2a   :  { %v79_v39 = vmin.f32 %v77_v34, -0.000100005  ;;  %v81_v44 = vmax.f32 %v75_v36, -9.2103405 }
  0x2b   :  { %v84_v40 = vmul.f32 1.442695, %v78_v37  ;;  %v82_v46 = vmin.f32 %v80_v41, -0.000100005 }
  0x2c   :  { %v86_v42 = vmul.f32 1.442695, %v79_v39  ;;  %v83_v48 = vmin.f32 %v81_v44, -0.000100005 }
  0x2d   :  { %187 = vpow2.f32 %v84_v40 }
  0x2e   :  { %189 = vpow2.f32 %v86_v42 }
  0x33   :  { %v188_v50 = vpop.eup %187 }
  0x34   :  { %v190_v51 = vpop.eup %189  ;;  %v88_v52 = vsub.f32 1.0, %v188_v50  ;;  %v116_v54 = vmul.f32 %v188_v50, %v82_v46 }
  0x35   :  { %v89_v55 = vsub.f32 1.0, %v190_v51  ;;  %v117_v57 = vmul.f32 %v190_v51, %v83_v48 }
  0x36   :  { %v110_v58 = vmul.f32 %v88_v52, %v78_v37  ;;  %v118_v59 = vmul.f32 %v188_v50, %v116_v54 }
  0x37   :  { %v111_v63 = vmul.f32 %v89_v55, %v79_v39  ;;  %v119_v0 = vmul.f32 %v190_v51, %v117_v57 }
  0x38   :  { %v112_v3 = vmul.f32 %v110_v58, %v88_v52  ;;  %v120_v4 = vmul.f32 %v118_v59, %v108_v53 }
  0x39   :  { %v113_v5 = vmul.f32 %v111_v63, %v89_v55  ;;  %v121_v6 = vmul.f32 %v119_v0, %v109_v56 }
  0x3a   :  { %v114_v7 = vmul.f32 %v167_v61, %v112_v3  ;;  %v122_v8 = vmul.f32 %v169_v62, %v120_v4 }
  0x3b   :  { %v115_v9 = vmul.f32 %v168_v1, %v113_v5  ;;  %v123_v10 = vmul.f32 %v170_v2, %v121_v6 }
  0x3c   :  { %v124_v11 = vadd.f32 %v122_v8, %v114_v7 }
  0x3d   :  { %v125_v12 = vadd.f32 %v123_v10, %v115_v9 }
  0x3f   :  { %v126_v13 = vadd.f32 %v125_v12, %v124_v11 }
  0x41   :  { %127 = vadd.xlane.f32.xlu0 %v126_v13 }
  0x49   :  { %139 = vadd.xlane.f32.xlu0 %v138_v14 }
  0xb4   :  { %v128_v15 = vpop.xlane.xlu0 %127 }
  0xb5   :  { %v129_v16 = vrot.slane %v128_v15, 4 }
  0xb7   :  { %v130_v17 = vadd.f32 %v129_v16, %v128_v15 }
  0xb9   :  { %v131_v18 = vrot.slane %v130_v17, 2 }
  0xbb   :  { %v132_v19 = vadd.f32 %v131_v18, %v130_v17 }
  0xbc   :  { %v140_v20 = vpop.xlane.xlu0 %139 }
  0xbd   :  { %v141_v21 = vrot.slane %v140_v20, 4  ;;  %v133_v22 = vrot.slane %v132_v19, 1 }
  0xbf   :  { %v142_v23 = vadd.f32 %v141_v21, %v140_v20  ;;  %v134_v24 = vadd.f32 %v133_v22, %v132_v19 }
  0xc1   :  { %v143_v25 = vrot.slane %v142_v23, 2  ;;  %171 = vpush %v134_v24 }
  0xc3   :  { %v144_v26 = vadd.f32 %v143_v25, %v142_v23 }
  0xc5   :  { %v145_v27 = vrot.slane %v144_v26, 1 }
  0xc7   :  { %v146_v28 = vadd.f32 %v145_v27, %v144_v26 }
  0xc9   :  { %173 = vpush %v146_v28 }
  0xf2   :  { %s172_s0 = spop %171 }
  0xf3   :  { %137 = sst [smem:[#allocation7]] %s172_s0 }
  0xfa   :  { %s174_s21 = spop %173 }
  0xfb   :  { %149 = sst [smem:[#allocation7 + $0x1]] %s174_s21 }
  0xfc   :  { %158 = dma.smem_to_hbm %s260_s22, 16, %s156_s20, [#allocation4]  }
  0xfd   :  { %255 = dma.done.wait [#allocation4], 16  }
  0xfe   :  { %256 = vsyncadd [#allocation4], 4294967280 }
  0xff   :  { %163 = sfence }
 0x100   :  { %164 = vsyncpa [#allocation3], 1 }
 0x101   :  { %165 = vsyncpa [#allocation6], 1 }
 0x102   :  { %166 = vsyncpa [#allocation4], 1 }

</bundles_post_ra>
